<compile_context>
chip_gen: v7x
topology: tpu7x:2x2x1
jax: 0.10.0
libtpu: 0.0.40
codegen_flags: <defaults>
</compile_context>

<pallas_src>
import jax
import jax.numpy as jnp
from jax.experimental import pallas as pl
from jax.experimental.pallas import tpu as pltpu


# -----------------------------------------------------------------------------
# Pallas kernel: copy one lane-dense (block_rows, lane) tile.
# -----------------------------------------------------------------------------
def _copy_kernel(x_ref, o_ref):
    o_ref[...] = x_ref[...]


_LANE_CANDIDATES = (2048, 1024, 512, 256, 128)  # last dim: large multiple of 128
_MAX_BLOCK_BYTES = 4 << 20     # 4 MiB blocks: amortize ~0.35us/step, VMEM-safe on v7x
_VMEM_LIMIT_BYTES = 32 << 20   # explicit limit (v5e default scoped is only 16 MiB)


def _sublane_pack(dtype) -> int:
    """Rows per packed sublane group: 8 for 32-bit, 16 for 16-bit, 32 for 8-bit."""
    itemsize = int(jnp.dtype(dtype).itemsize)
    return {4: 8, 2: 16, 1: 32}.get(itemsize, 8)


def _pick_block_rows(rows: int, lane: int, itemsize: int, pack: int):
    """Largest pack-aligned divisor of `rows` with block <= 4 MiB.

    Prefers a choice giving an even grid length (>= 2) so v7x's two
    TensorCores can both participate on the 'parallel' axis.
    """
    max_rows_by_bytes = _MAX_BLOCK_BYTES // (lane * itemsize)
    hi = min(rows, max_rows_by_bytes)
    valid = [r for r in range(pack, hi + 1, pack) if rows % r == 0]
    if not valid:
        return None
    even_grid = [r for r in valid if (rows // r) % 2 == 0]
    pool = even_grid if even_grid else valid
    return max(pool)


def pallas_identity_copy(img: jax.Array, *, donate: bool = False) -> jax.Array:
    """Materialize a fresh copy of `img` via a lane-dense, chunked Pallas kernel.

    With donate=True the output aliases the input HBM buffer
    (input_output_aliases={0: 0}); only use when the caller donates `img`.
    """
    total = int(img.size)
    if total == 0:
        return img
    itemsize = int(jnp.dtype(img.dtype).itemsize)
    pack = _sublane_pack(img.dtype)

    io_alias = {0: 0} if donate else {}
    cparams = pltpu.CompilerParams(
        dimension_semantics=("parallel",),
        vmem_limit_bytes=_VMEM_LIMIT_BYTES,
    )

    lane = next((l for l in _LANE_CANDIDATES if total % l == 0), None)
    if lane is not None:
        rows = total // lane
        flat = img.reshape(rows, lane)
        block_rows = _pick_block_rows(rows, lane, itemsize, pack)
        if block_rows is None:
            if rows * lane * itemsize > _MAX_BLOCK_BYTES:
                # Awkward row count on a large array: the zero-copy identity is
                # exact and strictly cheaper than any copy.
                return img
            block_rows = rows  # single full-extent block (always legal)
        grid = (rows // block_rows,)
        out_flat = pl.pallas_call(
            _copy_kernel,
            out_shape=jax.ShapeDtypeStruct((rows, lane), img.dtype),
            grid=grid,
            in_specs=[pl.BlockSpec((block_rows, lane), lambda i: (i, 0))],
            out_specs=pl.BlockSpec((block_rows, lane), lambda i: (i, 0)),
            compiler_params=cparams,
            input_output_aliases=io_alias,
        )(flat)
        return out_flat.reshape(img.shape)

    # No clean lane-dense flattening: one full-extent block if small, else the
    # zero-copy identity (exact).
    if total * itemsize > _MAX_BLOCK_BYTES:
        return img
    flat = img.reshape(1, total)
    out_flat = pl.pallas_call(
        _copy_kernel,
        out_shape=jax.ShapeDtypeStruct((1, total), img.dtype),
        grid=(1,),
        in_specs=[pl.BlockSpec((1, total), lambda i: (0, 0))],
        out_specs=pl.BlockSpec((1, total), lambda i: (0, 0)),
        compiler_params=cparams,
        input_output_aliases=io_alias,
    )(flat)
    return out_flat.reshape(img.shape)


class FeatureExtractor:
    """JAX/Pallas analog of the abstract PyTorch FeatureExtractor."""

    def __init__(self):
        self._feature_channels = None

    @property
    def feature_channels(self):
        if self._feature_channels is None:
            # Mirrors torch.empty(1, 3, 128, 128) -> forward -> .size(1).
            # forward is a zero-copy identity, so this is pure shape metadata
            # (no kernel launch, no HBM traffic).
            tmp = self.forward(jnp.zeros((1, 3, 128, 128), dtype=jnp.float32))
            self._feature_channels = int(tmp.shape[1])
        return self._feature_channels

    def forward(self, img: jax.Array) -> jax.Array:
        # Identity pass-through: zero HBM traffic, zero launch overhead.
        return img

    def materialize(self, img: jax.Array, *, donate: bool = False) -> jax.Array:
        # Explicit fresh-buffer copy for callers that need one.
        return pallas_identity_copy(img, donate=donate)

    __call__ = forward


if __name__ == "__main__":
    key = jax.random.PRNGKey(0)
    k_small, k_big = jax.random.split(key)

    fx = FeatureExtractor()

    # Small NCHW batch — forward is the zero-copy identity.
    x = jax.random.normal(k_small, (2, 4, 16, 16), dtype=jnp.float32)
    out = jax.block_until_ready(fx(x))
    assert out.shape == x.shape and out.dtype == x.dtype
    assert bool(jnp.array_equal(out, x))

    # Explicit Pallas identity copy (single full-extent lane-dense block).
    y = jax.block_until_ready(fx.materialize(x))
    assert y.shape == x.shape and y.dtype == x.dtype
    assert bool(jnp.array_equal(y, x))

    # Slightly larger copy exercising the tiled path: lane=2048, rows=128,
    # block_rows=64 -> even grid of (2,) so both v7x TensorCores participate.
    x_big = jax.random.normal(k_big, (2, 8, 128, 128), dtype=jnp.float32)
    y_big = jax.block_until_ready(pallas_identity_copy(x_big))
    assert y_big.shape == x_big.shape and y_big.dtype == x_big.dtype
    assert bool(jnp.array_equal(y_big, x_big))

    # feature_channels property analog — shape metadata only, no kernel launch.
    assert fx.feature_channels == 3

    print("KERNEL_OK")
</pallas_src>

<mosaic_0001>
module attributes {stable_mosaic.version = 11 : i64} {
  func.func @_copy_kernel(%arg0: i32, %arg1: memref<1x2048xf32, #tpu.memory_space<vmem>>, %arg2: memref<1x2048xf32, #tpu.memory_space<vmem>>) attributes {dimension_semantics = [#tpu.dimension_semantics<parallel>], iteration_bounds = array<i64: 1>, scalar_prefetch = 0 : i64, scratch_operands = 0 : i64, tpu.core_type = #tpu.core_type<tc>, window_params = [{transform_indices = @transform_0, window_bounds = array<i64: 1, 2048>}, {transform_indices = @transform_1, window_bounds = array<i64: 1, 2048>}]} {
    %c0 = arith.constant 0 : index
    %c0_0 = arith.constant 0 : index
    %0 = vector.load %arg1[%c0, %c0_0] : memref<1x2048xf32, #tpu.memory_space<vmem>>, vector<1x2048xf32>
    %c0_1 = arith.constant 0 : index
    %c0_2 = arith.constant 0 : index
    %1 = vector.load %arg2[%c0_1, %c0_2] : memref<1x2048xf32, #tpu.memory_space<vmem>>, vector<1x2048xf32>
    tpu.vector_store %arg2[%c0_1, %c0_2], %0 {strides = array<i32>} : memref<1x2048xf32, #tpu.memory_space<vmem>>, vector<1x2048xf32>,
    return
  }
  func.func @transform_0(%arg0: i32) -> (i32, i32) {
    %c0_i32 = arith.constant 0 : i32
    %c0_i32_0 = arith.constant 0 : i32
    return %arg0, %c0_i32 : i32, i32
  }
  func.func @transform_1(%arg0: i32) -> (i32, i32) {
    %c0_i32 = arith.constant 0 : i32
    %c0_i32_0 = arith.constant 0 : i32
    return %arg0, %c0_i32 : i32, i32
  }
}

</mosaic_0001>

<bundles_post_ra>
// kernel: tpu_custom_call.1
= control target key start
LH: loop header
LB: loop body
LE: loop exit
PB: predicated region body
PF: predicated region fallthrough
CT: control target
= control target key end

     0   :  { %6 = vsyncpa [#allocation3], 0  ;;  %s126_s0 = inlined_call_operand.hbm [shape: f32[1,2048], index: 0, kind: input, shape index: {}]   ;;  %s127_s1 = inlined_call_operand.hbm [shape: f32[1,2048], index: 1, kind: output, shape index: {}]  }
   0x1   :  { %7 = vsyncpa [#allocation4], 0  ;;  %s90_s6 = smov [#allocation2]   ;;  %s42_s10 = scalar_lea.hbm %s126_s0, 256 }
   0x2   :  { %s14_s7 = sshll.u32 %s90_s6, 4  ;;  %p43_p0 = scmp.ne.s32.totalorder %s126_s0, %s42_s10  ;;  %s15_s7 = int_to_ptr.vmem [resolvable:$true] %s14_s7 }
   0x3   :  { %p46_p1 = scmp.lt.u32.totalorder %s42_s10, %s126_s0 }
   0x5   :  { %p48_p2 = pnand %p46_p1, %p43_p0 }
   0x7   :  { %51 = shalt.err (!%p48_p2)
}
   0x8   :  { %s52_s15 = scalar_lea.vmem %s15_s7, 256  ;;  %p57_p4 = scmp.lt.s32.totalorder %s15_s7, %s15_s7 }
   0x9   :  { %p53_p3 = scmp.ne.s32.totalorder %s15_s7, %s52_s15  ;;  %p58_p5 = scmp.lt.s32.totalorder %s52_s15, %s52_s15 }
   0xb   :  { %p59_p6 = por %p58_p5, %p57_p4 }
   0xd   :  { %p60_p7 = pnand %p59_p6, %p53_p3 }
   0xf   :  { %63 = shalt.err (!%p60_p7)
}
  0x10   :  { %17 = dma.hbm_to_vmem [thread:$0]  %s126_s0, 256, %s15_s7, [#allocation3]  }
  0x11   :  { %86 = dma.done.wait [#allocation3], 256  }
  0x12   :  { %87 = vsyncadd [#allocation3], 4294967040  ;;  %s91_s18 = smov [#allocation5]   ;;  %v21_v0 = vld [vmem:[#allocation2] sm:$0xff]  ;;  %v22_v1 = vld [vmem:[#allocation2 + $0x8] sm:$0xff] }
  0x13   :  { %s31_s19 = sshll.u32 %s91_s18, 4  ;;  %23 = vst [vmem:[#allocation5] sm:$0xff] %v21_v0  ;;  %24 = vst [vmem:[#allocation5 + $0x8] sm:$0xff] %v22_v1  ;;  %s32_s19 = int_to_ptr.vmem [resolvable:$true] %s31_s19 }
  0x14   :  { %s64_s20 = scalar_lea.vmem %s32_s19, 256  ;;  %p69_p9 = scmp.lt.s32.totalorder %s32_s19, %s32_s19 }
  0x15   :  { %p65_p8 = scmp.ne.s32.totalorder %s32_s19, %s64_s20  ;;  %p70_p10 = scmp.lt.s32.totalorder %s64_s20, %s64_s20 }
  0x17   :  { %p71_p11 = por %p70_p10, %p69_p9 }
  0x19   :  { %p72_p12 = pnand %p71_p11, %p65_p8 }
  0x1b   :  { %75 = shalt.err (!%p72_p12)
}
  0x1c   :  { %s76_s0 = scalar_lea.hbm %s127_s1, 256 }
  0x1d   :  { %p77_p13 = scmp.ne.s32.totalorder %s127_s1, %s76_s0  ;;  %p80_p0 = scmp.lt.u32.totalorder %s76_s0, %s127_s1 }
  0x1f   :  { %p82_p1 = pnand %p80_p0, %p77_p13 }
  0x21   :  { %85 = shalt.err (!%p82_p1)
}
  0x22   :  { %34 = dma.vmem_to_hbm [thread:$0]  %s32_s19, 256, %s127_s1, [#allocation4]  }
  0x23   :  { %88 = dma.done.wait [#allocation4], 256  }
  0x24   :  { %89 = vsyncadd [#allocation4], 4294967040 }
  0x25   :  { %38 = vsyncpa [#allocation3], 1 }
  0x26   :  { %39 = vsyncpa [#allocation4], 1 }

</bundles_post_ra>
